<compile_context>
chip_gen: v5e
topology: v5e:2x2
jax: 0.10.0
libtpu: 0.0.40
codegen_flags: <defaults>
</compile_context>

<pallas_src>
import math
import functools

import jax
import jax.numpy as jnp
from jax import lax
from jax.experimental import pallas as pl
from jax.experimental.pallas import tpu as pltpu


def _arc_margin_kernel(xn_ref, w_ref, label_ref, o_ref, wn_ref, *,
                       s, cos_m, sin_m, th, mm, easy_margin, tile_o):
    # The weight block index depends only on the outer (O) grid axis, so the same
    # block stays resident in VMEM across the inner B loop; normalize it into the
    # bf16 scratch once per O tile (rsqrt runs on the EUP slot).
    @pl.when(pl.program_id(1) == 0)
    def _():
        w = w_ref[...].astype(jnp.float32)                          # (tO, D)
        inv = lax.rsqrt(jnp.maximum(jnp.sum(w * w, axis=-1, keepdims=True), 1e-24))
        wn_ref[...] = (w * inv).astype(jnp.bfloat16)

    xn = xn_ref[...]                                                # (tB, D) bf16, pre-normalized
    wn = wn_ref[...]                                                # (tO, D) bf16

    # cosine = xn @ wn^T: contract last axes so the weight tile feeds the MXU in
    # stored layout (no transpose); bf16 inputs, f32 accumulation.
    cosine = lax.dot_general(
        xn, wn,
        dimension_numbers=(((1,), (1,)), ((), ())),
        preferred_element_type=jnp.float32)                         # (tB, tO) f32

    labels = label_ref[...]                                         # (tB, 1) int32
    col0 = pl.program_id(0) * tile_o
    col_ids = col0 + lax.broadcasted_iota(jnp.int32, (1, cosine.shape[1]), 1)
    hit = col_ids == labels                                         # (tB, tO), <=1 True per row

    # Margin math only matters at one column per row: gather that cosine with a
    # masked lane reduction (XLU), compute phi on the (tB, 1) vector, splice back.
    cos_l = jnp.sum(jnp.where(hit, cosine, 0.0), axis=-1, keepdims=True)
    sin_l = jnp.sqrt(jnp.maximum(1.0 - cos_l * cos_l, 0.0))         # clamp: no NaN from rounding
    phi = cos_l * cos_m - sin_l * sin_m
    if easy_margin:
        phi = jnp.where(cos_l > 0.0, phi, cos_l)
    else:
        phi = jnp.where(cos_l > th, phi, cos_l - mm)

    o_ref[...] = jnp.where(hit, phi * s, cosine * s).astype(o_ref.dtype)


def arc_margin_product(x, weight, label, *, s=30.0, m=0.5, easy_margin=False,
                       tile_b=256, tile_o=4096):
    """x: (B, in_features), weight: (out_features, in_features), label: (B,) int.
    Returns (B, out_features) float32 ArcFace logits."""
    B, D = x.shape
    O, D2 = weight.shape
    assert D == D2 and label.shape == (B,)

    cos_m = math.cos(m)
    sin_m = math.sin(m)
    th = math.cos(math.pi - m)
    mm = math.sin(math.pi - m) * m

    # Pre-normalize x once in the wrapper (tiny BxD op) so it is not redone for
    # every O tile; feed the MXU bf16 (halves x DMA bytes too).
    x32 = x.astype(jnp.float32)
    xn = (x32 * lax.rsqrt(
        jnp.maximum(jnp.sum(x32 * x32, axis=-1, keepdims=True), 1e-24))
          ).astype(jnp.bfloat16)
    weight = weight.astype(jnp.float32)
    label2d = label.astype(jnp.int32).reshape(B, 1)

    def _round_down(v, mult):
        return max(mult, (v // mult) * mult)

    # Tile sizes: B tile multiple of 8 (sublanes), O tile multiple of 128 (lanes),
    # with tO capped so the double-buffered f32 weight tile stays <= ~16 MiB
    # (D=512 -> tO<=4096, D=2048 -> tO<=1024).
    tB = B if B <= tile_b else _round_down(tile_b, 8)
    tO_cap = _round_down((8 * 1024 * 1024) // (4 * D), 128)
    tO = min(tile_o, tO_cap)
    tO = O if tO >= O else _round_down(tO, 128)

    gO = pl.cdiv(O, tO)
    gB = pl.cdiv(B, tB)

    kernel = functools.partial(
        _arc_margin_kernel,
        s=float(s), cos_m=cos_m, sin_m=sin_m, th=th, mm=mm,
        easy_margin=easy_margin, tile_o=tO,
    )

    # VMEM budget: double-buffered xn/weight/label/output tiles + the bf16
    # normalized-weight scratch, capped at ~85% of this chip's VMEM.
    try:
        vmem_cap = int(getattr(pltpu.get_tpu_info(), "vmem_capacity_bytes",
                               64 * 1024 * 1024))
    except Exception:  # pragma: no cover - conservative v7x-safe fallback
        vmem_cap = 64 * 1024 * 1024
    vmem_need = (2 * tB * D * 2          # xn tiles (bf16)
                 + 2 * tO * D * 4        # streamed weight tiles (f32)
                 + 2 * tB * 128 * 4      # label tiles ((tB,1) pads to 128 lanes)
                 + 2 * tB * tO * 4       # output tiles (f32)
                 + tO * D * 2)           # wn scratch (bf16)
    vmem_limit = int(min(max(int(1.5 * vmem_need), 16 * 1024 * 1024),
                         max(int(0.85 * vmem_cap), 16 * 1024 * 1024)))

    cost = pl.CostEstimate(
        flops=2 * B * O * D + 4 * O * D,
        transcendentals=O + B * gO,
        bytes_accessed=(4 * O * D          # weight read once (resident over B tiles)
                        + 2 * B * D * gO   # bf16 xn re-streamed per O tile
                        + 4 * B * O        # f32 output
                        + 4 * B * gO),     # labels
    )

    grid_spec = pltpu.PrefetchScalarGridSpec(
        num_scalar_prefetch=0,
        # O outer ("parallel"): megacore gets disjoint weight/output columns.
        # B inner ("arbitrary"): weight block index constant across consecutive
        # steps (no re-DMA) and the wn scratch computed at i==0 stays valid.
        grid=(gO, gB),
        in_specs=[
            pl.BlockSpec((tB, D), lambda j, i: (i, 0)),   # xn tile (bf16)
            pl.BlockSpec((tO, D), lambda j, i: (j, 0)),   # weight tile (resident)
            pl.BlockSpec((tB, 1), lambda j, i: (i, 0)),   # labels for this B tile
        ],
        out_specs=pl.BlockSpec((tB, tO), lambda j, i: (i, j)),
        scratch_shapes=[pltpu.VMEM((tO, D), jnp.bfloat16)],
    )

    return pl.pallas_call(
        kernel,
        out_shape=jax.ShapeDtypeStruct((B, O), jnp.float32),
        grid_spec=grid_spec,
        compiler_params=pltpu.CompilerParams(
            dimension_semantics=("parallel", "arbitrary"),
            vmem_limit_bytes=vmem_limit,
        ),
        cost_estimate=cost,
    )(xn, weight, label2d)


def _reference(x, weight, label, *, s=30.0, m=0.5, easy_margin=False):
    """Pure-JAX reference mirroring the PyTorch forward."""
    cos_m, sin_m = math.cos(m), math.sin(m)
    th = math.cos(math.pi - m)
    mm = math.sin(math.pi - m) * m
    xn = x / jnp.maximum(jnp.linalg.norm(x, axis=1, keepdims=True), 1e-12)
    wn = weight / jnp.maximum(jnp.linalg.norm(weight, axis=1, keepdims=True), 1e-12)
    cosine = xn @ wn.T
    sine = jnp.sqrt(1.0 - cosine ** 2)
    phi = cosine * cos_m - sine * sin_m
    if easy_margin:
        phi = jnp.where(cosine > 0, phi, cosine)
    else:
        phi = jnp.where(cosine > th, phi, cosine - mm)
    one_hot = jax.nn.one_hot(label, cosine.shape[1], dtype=jnp.float32)
    return (one_hot * phi + (1.0 - one_hot) * cosine) * s


if __name__ == "__main__":
    in_features = 32
    out_features = 128
    batch = 8

    key = jax.random.PRNGKey(0)
    kx, kw, kl = jax.random.split(key, 3)

    # Deterministic xavier_uniform_-style init for weight (out_features, in_features).
    bound = math.sqrt(6.0 / (in_features + out_features))
    weight = jax.random.uniform(
        kw, (out_features, in_features), jnp.float32, minval=-bound, maxval=bound)

    x = jax.random.normal(kx, (batch, in_features), jnp.float32)
    label = jax.random.randint(kl, (batch,), 0, out_features, jnp.int32)

    out = arc_margin_product(x, weight, label, s=30.0, m=0.5, easy_margin=False)
    out = jax.block_until_ready(out)

    ref = _reference(x, weight, label, s=30.0, m=0.5, easy_margin=False)
    assert out.shape == (batch, out_features)
    # bf16 MXU inputs (f32 accumulation) => looser tolerance than a pure-f32 matmul.
    assert jnp.allclose(out, ref, atol=2e-1, rtol=2e-2), \
        float(jnp.max(jnp.abs(out - ref)))

    print("KERNEL_OK")
</pallas_src>

<mosaic_0001>
module attributes {stable_mosaic.version = 11 : i64} {
  func.func @_arc_margin_kernel(%arg0: i32, %arg1: i32, %arg2: memref<8x32xbf16, #tpu.memory_space<vmem>>, %arg3: memref<128x32xf32, #tpu.memory_space<vmem>>, %arg4: memref<8x1xi32, #tpu.memory_space<vmem>>, %arg5: memref<8x128xf32, #tpu.memory_space<vmem>>, %arg6: memref<128x32xbf16, #tpu.memory_space<vmem>>) attributes {dimension_semantics = [#tpu.dimension_semantics<parallel>, #tpu.dimension_semantics<arbitrary>], iteration_bounds = array<i64: 1, 1>, scalar_prefetch = 0 : i64, scratch_operands = 1 : i64, tpu.core_type = #tpu.core_type<tc>, window_params = [{transform_indices = @transform_0, window_bounds = array<i64: 8, 32>}, {transform_indices = @transform_1, window_bounds = array<i64: 128, 32>}, {transform_indices = @transform_2, window_bounds = array<i64: 8, 1>}, {transform_indices = @transform_3, window_bounds = array<i64: 8, 128>}]} {
    %c0_i32 = arith.constant 0 : i32
    %0 = arith.cmpi eq, %arg1, %c0_i32 : i32
    %1 = arith.extui %0 : i1 to i32
    %c0_i32_0 = arith.constant 0 : i32
    %2 = arith.cmpi ne, %1, %c0_i32_0 : i32
    scf.if %2 {
      %c0_18 = arith.constant 0 : index
      %c0_19 = arith.constant 0 : index
      %42 = vector.load %arg3[%c0_18, %c0_19] : memref<128x32xf32, #tpu.memory_space<vmem>>, vector<128x32xf32>
      %43 = arith.mulf %42, %42 : vector<128x32xf32>
      %cst_20 = arith.constant dense<0.000000e+00> : vector<128xf32>
      %44 = vector.multi_reduction <add>, %43, %cst_20 [1] : vector<128x32xf32> to vector<128xf32>
      %45 = vector.shape_cast %44 : vector<128xf32> to vector<128x1xf32>
      %cst_21 = arith.constant 1.000000e-24 : f32
      %46 = vector.broadcast %cst_21 : f32 to vector<128x1xf32>
      %47 = arith.maximumf %45, %46 : vector<128x1xf32>
      %48 = math.rsqrt %47 : vector<128x1xf32>
      %49 = vector.broadcast %48 : vector<128x1xf32> to vector<128x32xf32>
      %50 = arith.mulf %42, %49 : vector<128x32xf32>
      %51 = arith.truncf %50 : vector<128x32xf32> to vector<128x32xbf16>
      %c0_22 = arith.constant 0 : index
      %c0_23 = arith.constant 0 : index
      %52 = vector.load %arg6[%c0_22, %c0_23] : memref<128x32xbf16, #tpu.memory_space<vmem>>, vector<128x32xbf16>
      tpu.vector_store %arg6[%c0_22, %c0_23], %51 {strides = array<i32>} : memref<128x32xbf16, #tpu.memory_space<vmem>>, vector<128x32xbf16>,
    } else {
    }
    %c0 = arith.constant 0 : index
    %c0_1 = arith.constant 0 : index
    %3 = vector.load %arg2[%c0, %c0_1] : memref<8x32xbf16, #tpu.memory_space<vmem>>, vector<8x32xbf16>
    %c0_2 = arith.constant 0 : index
    %c0_3 = arith.constant 0 : index
    %4 = vector.load %arg6[%c0_2, %c0_3] : memref<128x32xbf16, #tpu.memory_space<vmem>>, vector<128x32xbf16>
    %cst = arith.constant dense<0.000000e+00> : vector<8x128xf32>
    %5 = tpu.matmul %3, %4, %cst {dimension_numbers = #tpu.dot_dimension_numbers<[1], [1], [0], [0], [0, 0, 1, 0], [], []>} : vector<8x32xbf16>, vector<128x32xbf16>, vector<8x128xf32> -> vector<8x128xf32>
    %c0_4 = arith.constant 0 : index
    %c0_5 = arith.constant 0 : index
    %6 = vector.load %arg4[%c0_4, %c0_5] : memref<8x1xi32, #tpu.memory_space<vmem>>, vector<8x1xi32>
    %c128_i32 = arith.constant 128 : i32
    %7 = arith.muli %arg0, %c128_i32 : i32
    %8 = tpu.iota {dimensions = array<i32: 1>} : vector<1x128xi32>
    %9 = vector.broadcast %7 : i32 to vector<1x128xi32>
    %10 = arith.addi %9, %8 : vector<1x128xi32>
    %11 = vector.broadcast %10 : vector<1x128xi32> to vector<8x128xi32>
    %12 = vector.broadcast %6 : vector<8x1xi32> to vector<8x128xi32>
    %13 = arith.cmpi eq, %11, %12 : vector<8x128xi32>
    %cst_6 = arith.constant 0.000000e+00 : f32
    %14 = vector.broadcast %cst_6 : f32 to vector<8x128xf32>
    %15 = arith.select %13, %5, %14 : vector<8x128xi1>, vector<8x128xf32>
    %cst_7 = arith.constant dense<0.000000e+00> : vector<8xf32>
    %16 = vector.multi_reduction <add>, %15, %cst_7 [1] : vector<8x128xf32> to vector<8xf32>
    %17 = vector.shape_cast %16 : vector<8xf32> to vector<8x1xf32>
    %18 = arith.mulf %17, %17 : vector<8x1xf32>
    %cst_8 = arith.constant 1.000000e+00 : f32
    %19 = vector.broadcast %cst_8 : f32 to vector<8x1xf32>
    %20 = arith.subf %19, %18 : vector<8x1xf32>
    %cst_9 = arith.constant 0.000000e+00 : f32
    %21 = vector.broadcast %cst_9 : f32 to vector<8x1xf32>
    %22 = arith.maximumf %20, %21 : vector<8x1xf32>
    %23 = math.sqrt %22 : vector<8x1xf32>
    %cst_10 = arith.constant 0.87758255 : f32
    %24 = vector.broadcast %cst_10 : f32 to vector<8x1xf32>
    %25 = arith.mulf %17, %24 : vector<8x1xf32>
    %cst_11 = arith.constant 0.47942555 : f32
    %26 = vector.broadcast %cst_11 : f32 to vector<8x1xf32>
    %27 = arith.mulf %23, %26 : vector<8x1xf32>
    %28 = arith.subf %25, %27 : vector<8x1xf32>
    %cst_12 = arith.constant -0.87758255 : f32
    %29 = vector.broadcast %cst_12 : f32 to vector<8x1xf32>
    %30 = arith.cmpf ogt, %17, %29 : vector<8x1xf32>
    %cst_13 = arith.constant 0.239712775 : f32
    %31 = vector.broadcast %cst_13 : f32 to vector<8x1xf32>
    %32 = arith.subf %17, %31 : vector<8x1xf32>
    %33 = arith.select %30, %28, %32 : vector<8x1xi1>, vector<8x1xf32>
    %cst_14 = arith.constant 3.000000e+01 : f32
    %34 = vector.broadcast %cst_14 : f32 to vector<8x1xf32>
    %35 = arith.mulf %33, %34 : vector<8x1xf32>
    %cst_15 = arith.constant 3.000000e+01 : f32
    %36 = vector.broadcast %cst_15 : f32 to vector<8x128xf32>
    %37 = arith.mulf %5, %36 : vector<8x128xf32>
    %38 = vector.shape_cast %35 : vector<8x1xf32> to vector<8x1xf32>
    %39 = vector.broadcast %38 : vector<8x1xf32> to vector<8x128xf32>
    %40 = arith.select %13, %39, %37 : vector<8x128xi1>, vector<8x128xf32>
    %c0_16 = arith.constant 0 : index
    %c0_17 = arith.constant 0 : index
    %41 = vector.load %arg5[%c0_16, %c0_17] : memref<8x128xf32, #tpu.memory_space<vmem>>, vector<8x128xf32>
    tpu.vector_store %arg5[%c0_16, %c0_17], %40 {strides = array<i32>} : memref<8x128xf32, #tpu.memory_space<vmem>>, vector<8x128xf32>,
    return
  }
  func.func @transform_0(%arg0: i32, %arg1: i32) -> (i32, i32) {
    %c0_i32 = arith.constant 0 : i32
    %c0_i32_0 = arith.constant 0 : i32
    return %arg1, %c0_i32 : i32, i32
  }
  func.func @transform_1(%arg0: i32, %arg1: i32) -> (i32, i32) {
    %c0_i32 = arith.constant 0 : i32
    %c0_i32_0 = arith.constant 0 : i32
    return %arg0, %c0_i32 : i32, i32
  }
  func.func @transform_2(%arg0: i32, %arg1: i32) -> (i32, i32) {
    %c0_i32 = arith.constant 0 : i32
    %c0_i32_0 = arith.constant 0 : i32
    return %arg1, %c0_i32 : i32, i32
  }
  func.func @transform_3(%arg0: i32, %arg1: i32) -> (i32, i32) {
    %c0_i32 = arith.constant 0 : i32
    return %arg1, %arg0 : i32, i32
  }
}

</mosaic_0001>

<bundles_post_ra>
// kernel: tpu_custom_call.1
= control target key start
LH: loop header
LB: loop body
LE: loop exit
PB: predicated region body
PF: predicated region fallthrough
CT: control target
= control target key end

     0   :  { %vm51_vm0 = vcmask 261120   ;;  %s999_s0 = inlined_call_operand.vmem [shape: bf16[8,32], index: 0, kind: input, shape index: {}]   ;;  %s1000_s1 = inlined_call_operand.vmem [shape: f32[128,32], index: 1, kind: input, shape index: {}]   ;;  %s1001_s2 = inlined_call_operand.vmem [shape: s32[8,1], index: 2, kind: input, shape index: {}]   ;;  %s1002_s3 = inlined_call_operand.hbm [shape: f32[8,128], index: 3, kind: output, shape index: {}]  }
   0x1   :  { %v608_v0 = vld [vmem:[%s1000_s1 + $0x70] sm:$0xff]  ;;  %v613_v1 = vld [vmem:[%s1000_s1 + $0x60] sm:$0xff]  ;;  %v629_v6 = vld [vmem:[%s1000_s1 + $0x78] sm:$0xff] }
   0x2   :  { %v618_v2 = vld [vmem:[%s1000_s1 + $0x50] sm:$0xff]  ;;  %v49_v3 = vmul.f32 %v608_v0, %v608_v0  ;;  %v47_v4 = vmul.f32 %v613_v1, %v613_v1  ;;  %v634_v7 = vld [vmem:[%s1000_s1 + $0x68] sm:$0xff]  ;;  %v642_v11 = vld [vmem:[%s1000_s1 + $0x58] sm:$0xff]  ;;  %v50_v12 = vmul.f32 %v629_v6, %v629_v6 }
   0x3   :  { %v45_v5 = vmul.f32 %v618_v2, %v618_v2  ;;  %v48_v13 = vmul.f32 %v634_v7, %v634_v7 }
   0x4   :  { %v94_v8 = vsel %vm51_vm0, %v49_v3, 0.0  ;;  %v88_v9 = vsel %vm51_vm0, %v47_v4, 0.0 }
   0x5   :  { %v82_v10 = vsel %vm51_vm0, %v45_v5, 0.0  ;;  %95 = vadd.xlane.f32.xlu0 %v94_v8  ;;  %89 = vadd.xlane.f32.xlu1 %v88_v9 }
   0x6   :  { %83 = vadd.xlane.f32.xlu2 %v82_v10 }
   0x7   :  { %8 = vsyncpa [#allocation4], 0  ;;  %v46_v14 = vmul.f32 %v642_v11, %v642_v11  ;;  %v97_v15 = vsel %vm51_vm0, %v50_v12, 0.0  ;;  %v91_v16 = vsel %vm51_vm0, %v48_v13, 0.0  ;;  %v656_v18 = vld [vmem:[%s1000_s1 + $0x48] sm:$0xff]  ;;  %v661_v19 = vld [vmem:[%s1000_s1 + $0x40] sm:$0xff] }
   0x8   :  { %v666_v20 = vld [vmem:[%s1000_s1 + $0x30] sm:$0xff]  ;;  %v44_v21 = vmul.f32 %v656_v18, %v656_v18  ;;  %v43_v22 = vmul.f32 %v661_v19, %v661_v19  ;;  %v679_v26 = vld [vmem:[%s1000_s1 + $0x38] sm:$0xff]  ;;  %v685_v28 = vld [vmem:[%s1000_s1 + $0x20] sm:$0xff]  ;;  %vm308_vm1 = vcmask 257024   ;;  %s468_s22 = sshll.u32 %s1002_s3, 4  ;;  %s469_s22 = int_to_ptr.hbm [resolvable:$true] %s468_s22 }
   0x9   :  { %v85_v17 = vsel %vm51_vm0, %v46_v14, 0.0  ;;  %v41_v23 = vmul.f32 %v666_v20, %v666_v20  ;;  %v690_v29 = vld [vmem:[%s1000_s1 + $0x28] sm:$0xff]  ;;  %v42_v30 = vmul.f32 %v679_v26, %v679_v26  ;;  %v39_v31 = vmul.f32 %v685_v28, %v685_v28  ;;  %v704_v36 = vld [vmem:[%s1000_s1 + $0x18] sm:$0xff]  ;;  %v709_v37 = vld [vmem:[%s1000_s1 + $0x10] sm:$0xff] }
   0xa   :  { %v79_v24 = vsel %vm51_vm0, %v44_v21, 0.0  ;;  %v76_v25 = vsel %vm51_vm0, %v43_v22, 0.0  ;;  %v40_v32 = vmul.f32 %v690_v29, %v690_v29  ;;  %v714_v38 = vld [vmem:[%s1000_s1] sm:$0xff]  ;;  %v38_v39 = vmul.f32 %v704_v36, %v704_v36  ;;  %v727_v44 = vld [vmem:[%s1000_s1 + $0x8] sm:$0xff] }
   0xb   :  { %v70_v27 = vsel %vm51_vm0, %v41_v23, 0.0  ;;  %v73_v33 = vsel %vm51_vm0, %v42_v30, 0.0  ;;  %v64_v34 = vsel %vm51_vm0, %v39_v31, 0.0  ;;  %v37_v40 = vmul.f32 %v709_v37, %v709_v37 }
   0xc   :  { %v67_v35 = vsel %vm51_vm0, %v40_v32, 0.0  ;;  %v35_v41 = vmul.f32 %v714_v38, %v714_v38  ;;  %v61_v42 = vsel %vm51_vm0, %v38_v39, 0.0  ;;  %v36_v46 = vmul.f32 %v727_v44, %v727_v44 }
   0xd   :  { %98 = vadd.xlane.f32.xlu0 %v97_v15  ;;  %92 = vadd.xlane.f32.xlu1 %v91_v16  ;;  %v58_v43 = vsel %vm51_vm0, %v37_v40, 0.0 }
   0xe   :  { %86 = vadd.xlane.f32.xlu2 %v85_v17  ;;  %v52_v45 = vsel %vm51_vm0, %v35_v41, 0.0  ;;  %v55_v47 = vsel %vm51_vm0, %v36_v46, 0.0 }
  0x15   :  { %80 = vadd.xlane.f32.xlu1 %v79_v24  ;;  %77 = vadd.xlane.f32.xlu0 %v76_v25 }
  0x16   :  { %71 = vadd.xlane.f32.xlu2 %v70_v27 }
  0x1d   :  { %74 = vadd.xlane.f32.xlu0 %v73_v33  ;;  %65 = vadd.xlane.f32.xlu1 %v64_v34 }
  0x1e   :  { %68 = vadd.xlane.f32.xlu2 %v67_v35 }
  0x25   :  { %62 = vadd.xlane.f32.xlu1 %v61_v42  ;;  %59 = vadd.xlane.f32.xlu0 %v58_v43 }
  0x26   :  { %53 = vadd.xlane.f32.xlu2 %v52_v45 }
  0x2d   :  { %56 = vadd.xlane.f32.xlu0 %v55_v47 }
  0x78   :  { %v96_v48 = vpop.xlane.xlu0 %95  ;;  %v90_v49 = vpop.xlane.xlu1 %89 }
  0x79   :  { %v114_v50 = vmax.f32 %v96_v48, 1e-24  ;;  %v112_v51 = vmax.f32 %v90_v49, 1e-24  ;;  %v84_v52 = vpop.xlane.xlu2 %83 }
  0x7a   :  { %v110_v53 = vmax.f32 %v84_v52, 1e-24 }
  0x7b   :  { %523 = vrsqrt.f32 %v114_v50  ;;  %vm262_vm2 = vweird.f32 %v114_v50  ;;  %vm242_vm4 = vweird.f32 %v112_v51 }
  0x7c   :  { %525 = vrsqrt.f32 %v112_v51  ;;  %vm222_vm5 = vweird.f32 %v110_v53 }
  0x7d   :  { %527 = vrsqrt.f32 %v110_v53 }
  0x80   :  { %v99_v54 = vpop.xlane.xlu0 %98  ;;  %v93_v55 = vpop.xlane.xlu1 %92 }
  0x81   :  { %v524_v56 = vpop.eup %523  ;;  %v733_v57 = vmax.f32 %v99_v54, 1e-24  ;;  %v735_v58 = vmax.f32 %v93_v55, 1e-24  ;;  %v87_v59 = vpop.xlane.xlu2 %86 }
  0x82   :  { %v526_v60 = vpop.eup %525  ;;  %v257_v61 = vmul.f32 %v524_v56, %v114_v50  ;;  %v737_v62 = vmax.f32 %v87_v59, 1e-24  ;;  %vm263_vm3 = vweird.f32 %v524_v56 }
  0x83   :  { %v528_v63 = vpop.eup %527  ;;  %v237_v3 = vmul.f32 %v526_v60, %v112_v51  ;;  %529 = vrsqrt.f32 %v733_v57  ;;  %vm243_vm6 = vweird.f32 %v526_v60  ;;  %vm272_vm8 = vweird.f32 %v733_v57  ;;  %vm264_vm10 = vmor %vm262_vm2, %vm263_vm3 }
  0x84   :  { %v258_v4 = vmul.f32 %v524_v56, %v257_v61  ;;  %v217_v5 = vmul.f32 %v528_v63, %v110_v53  ;;  %531 = vrsqrt.f32 %v735_v58  ;;  %vm223_vm7 = vweird.f32 %v528_v63  ;;  %vm244_vm13 = vmor %vm242_vm4, %vm243_vm6 }
  0x85   :  { %v238_v8 = vmul.f32 %v526_v60, %v237_v3  ;;  %533 = vrsqrt.f32 %v737_v62  ;;  %vm252_vm9 = vweird.f32 %v735_v58  ;;  %vm232_vm11 = vweird.f32 %v737_v62  ;;  %vm759_vm12 = vmor %vm222_vm5, %vm223_vm7 }
  0x86   :  { %v259_v9 = vmul.f32 0.5, %v258_v4  ;;  %v218_v10 = vmul.f32 %v528_v63, %v217_v5 }
  0x87   :  { %v239_v12 = vmul.f32 0.5, %v238_v8 }
  0x88   :  { %v260_v13 = vsub.f32 1.5, %v259_v9  ;;  %v219_v14 = vmul.f32 0.5, %v218_v10  ;;  %v81_v15 = vpop.xlane.xlu1 %80  ;;  %v78_v16 = vpop.xlane.xlu0 %77 }
  0x89   :  { %v742_v17 = vpop.eup %529  ;;  %v240_v21 = vsub.f32 1.5, %v239_v12  ;;  %v746_v22 = vmax.f32 %v81_v15, 1e-24  ;;  %v72_v23 = vpop.xlane.xlu2 %71  ;;  %v766_v35 = vmax.f32 %v78_v16, 1e-24 }
  0x8a   :  { %v748_v24 = vpop.eup %531  ;;  %v261_v25 = vmul.f32 %v524_v56, %v260_v13  ;;  %v220_v27 = vsub.f32 1.5, %v219_v14  ;;  %v267_v30 = vmul.f32 %v742_v17, %v733_v57  ;;  %vm273_vm14 = vweird.f32 %v742_v17 }
  0x8b   :  { %v755_v31 = vpop.eup %533  ;;  %v241_v32 = vmul.f32 %v526_v60, %v240_v21  ;;  %v247_v34 = vmul.f32 %v748_v24, %v735_v58  ;;  %535 = vrsqrt.f32 %v746_v22  ;;  %vm253_vm2 = vweird.f32 %v748_v24  ;;  %vm274_vm3 = vmor %vm272_vm8, %vm273_vm14 }
  0x8c   :  { %v265_v39 = vsel %vm264_vm10, %v524_v56, %v261_v25  ;;  %v221_v40 = vmul.f32 %v528_v63, %v220_v27  ;;  %v268_v41 = vmul.f32 %v742_v17, %v267_v30  ;;  %v227_v42 = vmul.f32 %v755_v31, %v737_v62  ;;  %vm254_vm6 = vmor %vm252_vm9, %vm253_vm2 }
  0x8d   :  { %v290_v43 = vmul.f32 %v265_v39, %v608_v0  ;;  %v245_v45 = vsel %vm244_vm13, %v526_v60, %v241_v32  ;;  %v248_v46 = vmul.f32 %v748_v24, %v247_v34  ;;  %vm233_vm15 = vweird.f32 %v755_v31 }
  0x8e   :  { %v288_v47 = vmul.f32 %v245_v45, %v613_v1  ;;  %v225_v48 = vsel %vm759_vm12, %v528_v63, %v221_v40  ;;  %v269_v49 = vmul.f32 0.5, %v268_v41  ;;  %v228_v50 = vmul.f32 %v755_v31, %v227_v42  ;;  %vm803_vm4 = vmor %vm232_vm11, %vm233_vm15 }
  0x8f   :  { %v306_v51 = vpack.c.bf16 %v290_v43, %v290_v43  ;;  %v286_v52 = vmul.f32 %v225_v48, %v618_v2  ;;  %v249_v53 = vmul.f32 0.5, %v248_v46  ;;  %537 = vrsqrt.f32 %v766_v35 }
  0x90   :  { %v304_v0 = vpack.c.bf16 %v288_v47, %v288_v47  ;;  %v270_v54 = vsub.f32 1.5, %v269_v49  ;;  %v229_v55 = vmul.f32 0.5, %v228_v50  ;;  %v75_v56 = vpop.xlane.xlu0 %74  ;;  %v66_v59 = vpop.xlane.xlu1 %65  ;;  %vm212_vm5 = vweird.f32 %v746_v22 }
  0x91   :  { %v783_v1 = vpop.eup %535  ;;  %323 = vst.msk [vmem:[#allocation2 + $0x38] sm:$0xf] %vm308_vm1, %v306_v51  ;;  %v302_v60 = vpack.c.bf16 %v286_v52, %v286_v52  ;;  %v250_v61 = vsub.f32 1.5, %v249_v53  ;;  %v787_v63 = vmax.f32 %v75_v56, 1e-24  ;;  %v69_v2 = vpop.xlane.xlu2 %68  ;;  %vm202_vm8 = vweird.f32 %v766_v35 }
  0x92   :  { %321 = vst.msk [vmem:[#allocation2 + $0x30] sm:$0xf] %vm308_vm1, %v304_v0  ;;  %v271_v3 = vmul.f32 %v742_v17, %v270_v54  ;;  %v230_v4 = vsub.f32 1.5, %v229_v55  ;;  %v207_v5 = vmul.f32 %v783_v1, %v746_v22  ;;  %v809_v57 = vmax.f32 %v72_v23, 1e-24 }
  0x93   :  { %319 = vst.msk [vmem:[#allocation2 + $0x28] sm:$0xf] %vm308_vm1, %v302_v60  ;;  %v251_v8 = vmul.f32 %v748_v24, %v250_v61  ;;  %539 = vrsqrt.f32 %v787_v63  ;;  %v818_v13 = vmax.f32 %v69_v2, 1e-24  ;;  %vm213_vm7 = vweird.f32 %v783_v1 }
  0x94   :  { %v275_v10 = vsel %vm274_vm3, %v742_v17, %v271_v3  ;;  %v231_v12 = vmul.f32 %v755_v31, %v230_v4  ;;  %v208_v62 = vmul.f32 %v783_v1, %v207_v5  ;;  %541 = vrsqrt.f32 %v809_v57  ;;  %vm844_vm9 = vmor %vm212_vm5, %vm213_vm7 }
  0x95   :  { %v291_v14 = vmul.f32 %v275_v10, %v629_v6  ;;  %v255_v15 = vsel %vm254_vm6, %v748_v24, %v251_v8  ;;  %v824_v16 = vpop.eup %537  ;;  %543 = vrsqrt.f32 %v818_v13  ;;  %v835_v30 = vmax.f32 %v66_v59, 1e-24 }
  0x96   :  { %v289_v17 = vmul.f32 %v255_v15, %v634_v7  ;;  %v235_v58 = vsel %vm803_vm4, %v755_v31, %v231_v12  ;;  %v209_v21 = vmul.f32 0.5, %v208_v62  ;;  %v197_v24 = vmul.f32 %v824_v16, %v766_v35 }
  0x97   :  { %v307_v23 = vpack.c.bf16 %v291_v14, %v291_v14  ;;  %v287_v6 = vmul.f32 %v235_v58, %v642_v11  ;;  %vm192_vm10 = vweird.f32 %v787_v63  ;;  %545 = vrsqrt.f32 %v835_v30 }
  0x98   :  { %v305_v25 = vpack.c.bf16 %v289_v17, %v289_v17  ;;  %v210_v27 = vsub.f32 1.5, %v209_v21  ;;  %v63_v7 = vpop.xlane.xlu1 %62  ;;  %v60_v32 = vpop.xlane.xlu0 %59  ;;  %v198_v34 = vmul.f32 %v824_v16, %v197_v24  ;;  %vm203_vm11 = vweird.f32 %v824_v16 }
  0x99   :  { %v837_v33 = vpop.eup %539  ;;  %324 = vst.msk [vmem:[#allocation2 + $0x3c] sm:$0xf] %vm308_vm1, %v307_v23  ;;  %v303_v31 = vpack.c.bf16 %v287_v6, %v287_v6  ;;  %v850_v39 = vmax.f32 %v63_v7, 1e-24  ;;  %v857_v22 = vmax.f32 %v60_v32, 1e-24  ;;  %vm182_vm12 = vweird.f32 %v809_v57  ;;  %vm880_vm15 = vmor %vm202_vm8, %vm203_vm11 }
  0x9a   :  { %322 = vst.msk [vmem:[#allocation2 + $0x34] sm:$0xf] %vm308_vm1, %v305_v25  ;;  %v211_v40 = vmul.f32 %v783_v1, %v210_v27  ;;  %v187_v41 = vmul.f32 %v837_v33, %v787_v63  ;;  %v859_v42 = vpop.eup %541  ;;  %v199_v43 = vmul.f32 0.5, %v198_v34  ;;  %vm172_vm13 = vweird.f32 %v818_v13 }
  0x9b   :  { %320 = vst.msk [vmem:[#allocation2 + $0x2c] sm:$0xf] %vm308_vm1, %v303_v31  ;;  %547 = vrsqrt.f32 %v850_v39  ;;  %v865_v45 = vpop.eup %543  ;;  %v177_v48 = vmul.f32 %v859_v42, %v809_v57  ;;  %vm193_vm14 = vweird.f32 %v837_v33  ;;  %vm162_vm2 = vweird.f32 %v835_v30 }
  0x9c   :  { %v215_v46 = vsel %vm844_vm9, %v783_v1, %v211_v40  ;;  %v188_v47 = vmul.f32 %v837_v33, %v187_v41  ;;  %v200_v50 = vsub.f32 1.5, %v199_v43  ;;  %v167_v51 = vmul.f32 %v865_v45, %v818_v13  ;;  %vm902_vm6 = vmor %vm192_vm10, %vm193_vm14 }
  0x9d   :  { %v285_v49 = vmul.f32 %v215_v46, %v656_v18  ;;  %v178_v0 = vmul.f32 %v859_v42, %v177_v48  ;;  %549 = vrsqrt.f32 %v857_v22  ;;  %v54_v18 = vpop.xlane.xlu2 %53  ;;  %vm152_vm3 = vweird.f32 %v850_v39  ;;  %v890_v35 = vpop.eup %545 }
  0x9e   :  { %v189_v53 = vmul.f32 0.5, %v188_v47  ;;  %v201_v55 = vmul.f32 %v824_v16, %v200_v50  ;;  %v168_v56 = vmul.f32 %v865_v45, %v167_v51  ;;  %vm183_vm4 = vweird.f32 %v859_v42 }
  0x9f   :  { %v301_v54 = vpack.c.bf16 %v285_v49, %v285_v49  ;;  %v179_v1 = vmul.f32 0.5, %v178_v0  ;;  %vm173_vm5 = vweird.f32 %v865_v45  ;;  %v157_v5 = vmul.f32 %v890_v35, %v835_v30  ;;  %vm915_vm7 = vmor %vm182_vm12, %vm183_vm4 }
  0xa0   :  { %v190_v59 = vsub.f32 1.5, %v189_v53  ;;  %v518_v60 = vld [vmem:[#allocation2 + $0x38] sm:$0xff]  ;;  %v205_v2 = vsel %vm880_vm15, %v824_v16, %v201_v55  ;;  %v169_v4 = vmul.f32 0.5, %v168_v56  ;;  %v908_v8 = vmax.f32 %v54_v18, 1e-24  ;;  %v57_v17 = vpop.xlane.xlu0 %56  ;;  %vm930_vm9 = vmor %vm172_vm13, %vm173_vm5 }
  0xa1   :  { %v548_v61 = vpop.eup %547  ;;  %318 = vst.msk [vmem:[#allocation2 + $0x24] sm:$0xf] %vm308_vm1, %v301_v54  ;;  %v284_v9 = vmul.f32 %v205_v2, %v661_v19  ;;  %v180_v12 = vsub.f32 1.5, %v179_v1  ;;  %v158_v15 = vmul.f32 %v890_v35, %v157_v5  ;;  %vm163_vm8 = vweird.f32 %v890_v35  ;;  %v517_v40 = vld [vmem:[#allocation2 + $0x30] sm:$0xff] }
  0xa2   :  { %v191_v10 = vmul.f32 %v837_v33, %v190_v59  ;;  %v147_v62 = vmul.f32 %v548_v61, %v850_v39  ;;  %v170_v14 = vsub.f32 1.5, %v169_v4  ;;  %v408_v16 = vsel %vm51_vm0, %v518_v60, 0  ;;  %vm950_vm11 = vmor %vm162_vm2, %vm163_vm8 }
  0xa3   :  { %v550_v19 = vpop.eup %549  ;;  %v300_v58 = vpack.c.bf16 %v284_v9, %v284_v9  ;;  %v181_v57 = vmul.f32 %v859_v42, %v180_v12  ;;  %410 = vmatpush.bf16.xpose.msra.mxu0 %v408_v16  ;;  %v159_v27 = vmul.f32 0.5, %v158_v15  ;;  %vm153_vm10 = vweird.f32 %v548_v61 }
  0xa4   :  { %v195_v21 = vsel %vm902_vm6, %v837_v33, %v191_v10  ;;  %v148_v6 = vmul.f32 %v548_v61, %v147_v62  ;;  %v171_v25 = vmul.f32 %v865_v45, %v170_v14  ;;  %v137_v7 = vmul.f32 %v550_v19, %v857_v22  ;;  %vm154_vm12 = vmor %vm152_vm3, %vm153_vm10 }
  0xa5   :  { %v283_v24 = vmul.f32 %v195_v21, %v679_v26  ;;  %317 = vst.msk [vmem:[#allocation2 + $0x20] sm:$0xf] %vm308_vm1, %v300_v58  ;;  %v185_v32 = vsel %vm915_vm7, %v859_v42, %v181_v57  ;;  %v101_v33 = vmax.f32 %v57_v17, 1e-24  ;;  %v160_v34 = vsub.f32 1.5, %v159_v27  ;;  %v423_v58 = vld [vmem:[%s1001_s2] sm:$0xff] }
  0xa6   :  { %v149_v13 = vmul.f32 0.5, %v148_v6  ;;  %v282_v11 = vmul.f32 %v185_v32, %v666_v20  ;;  %v175_v26 = vsel %vm930_vm9, %v865_v45, %v171_v25  ;;  %v138_v46 = vmul.f32 %v550_v19, %v137_v7  ;;  %v325_v25 = vld [vmem:[%s999_s0] sm:$0xf]  ;;  %s584_s0 = smov [#allocation3]  }
  0xa7   :  { %v299_v31 = vpack.c.bf16 %v283_v24, %v283_v24  ;;  %v281_v41 = vmul.f32 %v175_v26, %v690_v29  ;;  %551 = vrsqrt.f32 %v101_v33  ;;  %v161_v45 = vmul.f32 %v890_v35, %v160_v34  ;;  %s466_s2 = sshll.u32 %s584_s0, 4  ;;  %s467_s2 = int_to_ptr.vmem [resolvable:$true] %s466_s2 }
  0xa8   :  { %v150_v43 = vsub.f32 1.5, %v149_v13  ;;  %v298_v20 = vpack.c.bf16 %v282_v11, %v282_v11  ;;  %vm142_vm13 = vweird.f32 %v857_v22  ;;  %553 = vrsqrt.f32 %v908_v8 }
  0xa9   :  { %316 = vst.msk [vmem:[#allocation2 + $0x1c] sm:$0xf] %vm308_vm1, %v299_v31  ;;  %v297_v29 = vpack.c.bf16 %v281_v41, %v281_v41  ;;  %v139_v47 = vmul.f32 0.5, %v138_v46  ;;  %vm143_vm14 = vweird.f32 %v550_v19  ;;  %v165_v48 = vsel %vm950_vm11, %v890_v35, %v161_v45  ;;  %v516_v35 = vld [vmem:[#allocation2 + $0x28] sm:$0xff] }
  0xaa   :  { %v151_v30 = vmul.f32 %v548_v61, %v150_v43  ;;  %315 = vst.msk [vmem:[#allocation2 + $0x18] sm:$0xf] %vm308_vm1, %v298_v20  ;;  %v405_v49 = vsel %vm51_vm0, %v517_v40, 0  ;;  %v280_v39 = vmul.f32 %v165_v48, %v685_v28  ;;  %vm144_vm15 = vmor %vm142_vm13, %vm143_vm14  ;;  %vm132_vm2 = vweird.f32 %v101_v33 }
  0xab   :  { %314 = vst.msk [vmem:[#allocation2 + $0x14] sm:$0xf] %vm308_vm1, %v297_v29  ;;  %v140_v51 = vsub.f32 1.5, %v139_v47  ;;  %411 = vmatpush.bf16.xpose.msra.mxu0 %v405_v49  ;;  %v402_v2 = vsel %vm51_vm0, %v516_v35, 0  ;;  %vm122_vm4 = vweird.f32 %v908_v8  ;;  %v425_v27 = vlaneseq }
  0xac   :  { %v155_v50 = vsel %vm154_vm12, %v548_v61, %v151_v30  ;;  %v296_v0 = vpack.c.bf16 %v280_v39, %v280_v39 }
  0xad   :  { %v279_v52 = vmul.f32 %v155_v50, %v704_v36  ;;  %v552_v53 = vpop.eup %551  ;;  %v141_v18 = vmul.f32 %v550_v19, %v140_v51  ;;  %v426_v7 = vand.u32 127, %v425_v27 }
  0xae   :  { %v554_v54 = vpop.eup %553  ;;  %v127_v56 = vmul.f32 %v552_v53, %v101_v33  ;;  %313 = vst.msk [vmem:[#allocation2 + $0x10] sm:$0xf] %vm308_vm1, %v296_v0  ;;  %vm133_vm3 = vweird.f32 %v552_v53 }
  0xaf   :  { %v295_v55 = vpack.c.bf16 %v279_v52, %v279_v52  ;;  %v145_v59 = vsel %vm144_vm15, %v550_v19, %v141_v18  ;;  %v117_v28 = vmul.f32 %v554_v54, %v908_v8  ;;  %vm123_vm5 = vweird.f32 %v554_v54  ;;  %vm134_vm6 = vmor %vm132_vm2, %vm133_vm3 }
  0xb0   :  { %v278_v1 = vmul.f32 %v145_v59, %v709_v37  ;;  %v128_v36 = vmul.f32 %v552_v53, %v127_v56  ;;  %vm124_vm7 = vmor %vm122_vm4, %vm123_vm5  ;;  %v515_v37 = vld [vmem:[#allocation2 + $0x20] sm:$0xff] }
  0xb1   :  { %312 = vst.msk [vmem:[#allocation2 + $0xc] sm:$0xf] %vm308_vm1, %v295_v55  ;;  %v118_v22 = vmul.f32 %v554_v54, %v117_v28  ;;  %v399_v15 = vsel %vm51_vm0, %v515_v37, 0  ;;  %v514_v17 = vld [vmem:[#allocation2 + $0x18] sm:$0xff] }
  0xb2   :  { %v294_v60 = vpack.c.bf16 %v278_v1, %v278_v1  ;;  %v129_v61 = vmul.f32 0.5, %v128_v36  ;;  %v396_v19 = vsel %vm51_vm0, %v514_v17, 0 }
  0xb3   :  { %v119_v3 = vmul.f32 0.5, %v118_v22  ;;  %412 = vmatpush.bf16.xpose.msra.mxu0 %v402_v2 }
  0xb4   :  { %311 = vst.msk [vmem:[#allocation2 + $0x8] sm:$0xf] %vm308_vm1, %v294_v60  ;;  %v130_v4 = vsub.f32 1.5, %v129_v61 }
  0xb5   :  { %v120_v5 = vsub.f32 1.5, %v119_v3 }
  0xb6   :  { %v131_v9 = vmul.f32 %v552_v53, %v130_v4 }
  0xb7   :  { %v121_v10 = vmul.f32 %v554_v54, %v120_v5 }
  0xb8   :  { %v135_v12 = vsel %vm134_vm6, %v552_v53, %v131_v9 }
  0xb9   :  { %v277_v62 = vmul.f32 %v135_v12, %v727_v44  ;;  %v125_v63 = vsel %vm124_vm7, %v554_v54, %v121_v10  ;;  %v583_v44 = vmov 0  }
  0xba   :  { %v276_v14 = vmul.f32 %v125_v63, %v714_v38  ;;  %521 = vset.pattern.permute.xlu1 %v583_v44  ;;  %522 = vset.pattern.permute.xlu0 %v583_v44  ;;  %v513_v38 = vld [vmem:[#allocation2 + $0x10] sm:$0xff] }
  0xbb   :  { %v293_v8 = vpack.c.bf16 %v277_v62, %v277_v62  ;;  %413 = vmatpush.bf16.xpose.msra.mxu0 %v399_v15  ;;  %430 = vperm.xlu1 %521, %v423_v58   ;;  %v393_v21 = vsel %vm51_vm0, %v513_v38, 0  ;;  %v512_v57 = vld [vmem:[#allocation2 + $0x8] sm:$0xff] }
  0xbc   :  { %v292_v16 = vpack.c.bf16 %v276_v14, %v276_v14  ;;  %v390_v23 = vsel %vm51_vm0, %v512_v57, 0 }
  0xbd   :  { %310 = vst.msk [vmem:[#allocation2 + $0x4] sm:$0xf] %vm308_vm1, %v293_v8 }
  0xbe   :  { %309 = vst.msk [vmem:[#allocation2] sm:$0xf] %vm308_vm1, %v292_v16 }
  0xc3   :  { %414 = vmatpush.bf16.xpose.msra.mxu0 %v396_v19 }
  0xc5   :  { %v511_v6 = vld [vmem:[#allocation2] sm:$0xff] }
  0xc6   :  { %v387_v24 = vsel %vm51_vm0, %v511_v6, 0 }
  0xcb   :  { %415 = vmatpush.bf16.xpose.msra.mxu0 %v393_v21 }
  0xd3   :  { %416 = vmatpush.bf16.xpose.msra.mxu0 %v390_v23 }
  0xdb   :  { %417 = vmatpush.bf16.xpose.msra.mxu0 %v387_v24 }
  0xe2   :  { %509 = vmatmul.msk.bf16.vlgmr.msra.gmra.mxu0 %vm51_vm0, %v325_v25 }
 0x12d   :  { %v431_v32 = vpop.permute.xlu1 %430 }
 0x12e   :  { %vm432_vm1 = vcmp.eq.s32.totalorder %v426_v7, %v431_v32 }
 0x15f   :  { %v419_v13 = vpop.f32.mrf.mxu0 }
 0x160   :  { %v433_v33 = vsel %vm432_vm1, %v419_v13, 0.0  ;;  %v458_v53 = vmul.f32 30.0, %v419_v13 }
 0x161   :  { %434 = vadd.xlane.f32.xlu2 %v433_v33 }
 0x167   :  { %v421_v31 = vpop.f32.mrf.mxu0 }
 0x1d4   :  { %v435_v11 = vpop.xlane.xlu2 %434 }
 0x1d5   :  { %v436_v26 = vmul.f32 %v435_v11, %v435_v11  ;;  %v451_v49 = vmul.f32 0.87758255, %v435_v11  ;;  %v510_v51 = vadd.f32 -0.23971277, %v435_v11  ;;  %vm454_vm9 = vcmp.gt.f32.partialorder %v435_v11, -0.87758255 }
 0x1d7   :  { %v437_v34 = vsub.f32 1.0, %v436_v26 }
 0x1d9   :  { %v438_v40 = vmax.f32 %v437_v34, 0.0 }
 0x1db   :  { %555 = vrsqrt.f32 %v438_v40  ;;  %vm446_vm0 = vcmp.eq.f32.partialorder %v438_v40, inf  ;;  %v449_v30 = vand.u32 2147483648, %v438_v40  ;;  %vm448_vm8 = vcmp.eq.f32.partialorder %v438_v40, 0.0 }
 0x1e1   :  { %v556_v41 = vpop.eup %555 }
 0x1e2   :  { %v440_v42 = vmul.f32 %v556_v41, %v438_v40 }
 0x1e4   :  { %v441_v43 = vmul.f32 %v556_v41, %v440_v42 }
 0x1e6   :  { %v442_v46 = vmul.f32 0.5, %v441_v43 }
 0x1e8   :  { %v443_v20 = vsub.f32 1.5, %v442_v46 }
 0x1ea   :  { %v444_v45 = vmul.f32 %v556_v41, %v443_v20 }
 0x1ec   :  { %v445_v29 = vmul.f32 %v444_v45, %v438_v40 }
 0x1ee   :  { %v447_v47 = vsel %vm446_vm0, %v438_v40, %v445_v29 }
 0x1ef   :  { %v450_v48 = vsel %vm448_vm8, %v449_v30, %v447_v47 }
 0x1f0   :  { %v452_v39 = vmul.f32 0.47942555, %v450_v48 }
 0x1f2   :  { %v453_v50 = vsub.f32 %v451_v49, %v452_v39 }
 0x1f4   :  { %v456_v52 = vsel %vm454_vm9, %v453_v50, %v510_v51 }
 0x1f5   :  { %v457_v0 = vmul.f32 30.0, %v456_v52 }
 0x1f7   :  { %v459_v18 = vsel %vm432_vm1, %v457_v0, %v458_v53 }
 0x1f8   :  { %460 = vst [vmem:[#allocation3] sm:$0xff] %v459_v18 }
 0x1f9   :  { %471 = dma.vmem_to_hbm [thread:$0]  %s467_s2, 128, %s469_s22, [#allocation4]  }
 0x1fa   :  { %581 = dma.done.wait [#allocation4], 128  }
 0x1fb   :  { %582 = vsyncadd [#allocation4], 4294967168 }
 0x1fc   :  { %476 = vsyncpa [#allocation4], 1 }

</bundles_post_ra>
